<compile_context>
chip_gen: v6e
topology: v6e:2x2x1
jax: 0.10.0
libtpu: 0.0.40
codegen_flags: <defaults>
</compile_context>

<pallas_src>
import jax
import jax.numpy as jnp
from jax.experimental import pallas as pl
from jax.experimental.pallas import tpu as pltpu


def _addpos_kernel(x_ref, pos_ref, o_ref):
    # (bB, bC) + (1, bC): broadcast over the leading dim on the VPU.
    # Add in the promoted dtype, store in the output dtype (PyTorch semantics).
    o_ref[...] = (x_ref[...] + pos_ref[...]).astype(o_ref.dtype)


def _round_up(v: int, m: int) -> int:
    return ((v + m - 1) // m) * m


def _round_down(v: int, m: int) -> int:
    return (v // m) * m


_TARGET_BLOCK_BYTES = 4 * 1024 * 1024   # ~4 MiB tiles: near HBM roofline, amortizes step cost
_MAX_BLOCK_BYTES = 6 * 1024 * 1024      # never let a single block exceed this


def _choose_tiling(B: int, row: int, x_item: int, out_item: int):
    """Pick (bB, bC) block dims for the (B, row) slab."""
    item = max(x_item, out_item)                 # budget against the widest streamed dtype
    mult = max(8, 32 // min(x_item, out_item))   # sublane packing multiple (8 f32 / 16 bf16 / 32 i8)
    row_bytes = row * item

    if mult * row_bytes <= _MAX_BLOCK_BYTES or row <= 128:
        # Full-width, lane-dense blocks.
        bC = row
        rows = max(1, _TARGET_BLOCK_BYTES // max(1, row_bytes))
        bB = B if rows >= B else max(mult, _round_down(rows, mult))
        bB = min(bB, B)
    else:
        # Column blocking: bound block bytes for any T*D while keeping the
        # column tile a large multiple of 128 lanes (unmasked vst except the
        # final edge block).
        bB = B if B <= mult else mult
        bC = min(row, max(128, _round_down(_TARGET_BLOCK_BYTES // (bB * item), 128)))

    # Keep both v7x TensorCores busy: if the whole slab collapsed to a single
    # block, split the batch (when it can be split on sublane multiples).
    nb, nc = pl.cdiv(B, bB), pl.cdiv(row, bC)
    if nb * nc < 2 and B > mult:
        bB = max(mult, _round_up(pl.cdiv(B, 2), mult))
        quarter = max(mult, _round_up(pl.cdiv(B, 4), mult))
        # Go to ~4 blocks only if the per-block slab stays comfortably large.
        if quarter < bB and quarter * bC * item >= (1 << 20):
            bB = quarter
    return bB, bC


def add_pos(x: jax.Array, dec_pos_embed: jax.Array) -> jax.Array:
    """x: (B, T, D); dec_pos_embed: (1, w, D) with w >= T."""
    B, T, D = x.shape
    row = T * D
    out_dtype = jnp.result_type(x.dtype, dec_pos_embed.dtype)

    # Lane-dense 2D views.  The pos slice is tiny ((1, T, D)) and made once;
    # no wrapper-side cast (promotion happens inside the kernel).
    x2 = x.reshape(B, row)
    pos2 = dec_pos_embed[:, :T, :].reshape(1, row)

    x_item = jnp.dtype(x.dtype).itemsize
    out_item = jnp.dtype(out_dtype).itemsize
    pos_item = jnp.dtype(pos2.dtype).itemsize

    bB, bC = _choose_tiling(B, row, x_item, out_item)
    nb = pl.cdiv(B, bB)
    nc = pl.cdiv(row, bC)

    # Right-size the scoped VMEM limit from the double-buffered pipeline
    # footprint (x + out + pos blocks) plus margin; never request all of
    # v7x's 64 MiB physical VMEM.
    pipeline_bytes = 2 * (bB * bC * (x_item + out_item) + bC * pos_item)
    vmem_limit = int(max(16 * 1024 * 1024, pipeline_bytes + 8 * 1024 * 1024))

    cost = pl.CostEstimate(
        flops=B * row,
        transcendentals=0,
        bytes_accessed=B * row * (x_item + out_item) + row * pos_item,
    )

    # Donate x's flat buffer into the output when dtypes match (saves an HBM
    # allocation; bandwidth is unchanged).
    io_aliases = {0: 0} if out_dtype == x.dtype else {}

    out2 = pl.pallas_call(
        _addpos_kernel,
        out_shape=jax.ShapeDtypeStruct((B, row), out_dtype),
        grid_spec=pltpu.PrefetchScalarGridSpec(
            num_scalar_prefetch=0,
            # Columns OUTER, batch INNER: the pos block index is constant over
            # the inner batch sweep, so Pallas skips its re-DMA between steps.
            grid=(nc, nb),
            in_specs=[
                pl.BlockSpec((bB, bC), lambda c, b: (b, c)),   # x slab
                pl.BlockSpec((1, bC), lambda c, b: (0, c)),    # shared pos slab
            ],
            out_specs=pl.BlockSpec((bB, bC), lambda c, b: (b, c)),
        ),
        compiler_params=pltpu.CompilerParams(
            dimension_semantics=("parallel", "parallel"),
            vmem_limit_bytes=vmem_limit,
        ),
        cost_estimate=cost,
        input_output_aliases=io_aliases,
    )(x2, pos2)

    return out2.reshape(B, T, D)


def init_dec_pos_embed(key: jax.Array, w: int, dim: int,
                       mean: float = 0.0, std: float = 1.0,
                       a: float = -2.0, b: float = 2.0) -> jnp.ndarray:
    """Deterministic trunc_normal_ init matching the PyTorch helper semantics."""
    z = jax.random.truncated_normal(
        key, (a - mean) / std, (b - mean) / std, shape=(1, w, dim),
        dtype=jnp.float32)
    return z * std + mean


if __name__ == "__main__":
    B, T, D = 2, 8, 32   # batch, seq, hidden (small test shapes)
    W = 16               # max positional length (w >= T)

    key = jax.random.PRNGKey(0)
    kx, kp = jax.random.split(key)

    x = jax.random.normal(kx, (B, T, D), dtype=jnp.float32)
    dec_pos_embed = init_dec_pos_embed(kp, W, D)

    # Reference (plain JAX broadcasted add), computed before the kernel call.
    y_ref = x + dec_pos_embed[:, :T, :]

    y = add_pos(x, dec_pos_embed)
    jax.block_until_ready(y)

    assert y.shape == (B, T, D)
    assert y.dtype == y_ref.dtype
    assert jnp.allclose(y, y_ref, atol=1e-6), "mismatch vs reference"

    print("KERNEL_OK")
</pallas_src>

<mosaic_0001>
module attributes {stable_mosaic.version = 11 : i64} {
  func.func @_addpos_kernel(%arg0: i32, %arg1: i32, %arg2: memref<2x256xf32, #tpu.memory_space<vmem>>, %arg3: memref<1x256xf32, #tpu.memory_space<vmem>>, %arg4: memref<2x256xf32, #tpu.memory_space<vmem>>) attributes {dimension_semantics = [#tpu.dimension_semantics<parallel>, #tpu.dimension_semantics<parallel>], iteration_bounds = array<i64: 1, 1>, scalar_prefetch = 0 : i64, scratch_operands = 0 : i64, tpu.core_type = #tpu.core_type<tc>, window_params = [{transform_indices = @transform_0, window_bounds = array<i64: 2, 256>}, {transform_indices = @transform_1, window_bounds = array<i64: 1, 256>}, {transform_indices = @transform_2, window_bounds = array<i64: 2, 256>}]} {
    %c0 = arith.constant 0 : index
    %c0_0 = arith.constant 0 : index
    %0 = vector.load %arg2[%c0, %c0_0] : memref<2x256xf32, #tpu.memory_space<vmem>>, vector<2x256xf32>
    %c0_1 = arith.constant 0 : index
    %c0_2 = arith.constant 0 : index
    %1 = vector.load %arg3[%c0_1, %c0_2] : memref<1x256xf32, #tpu.memory_space<vmem>>, vector<1x256xf32>
    %2 = vector.broadcast %1 : vector<1x256xf32> to vector<2x256xf32>
    %3 = arith.addf %0, %2 : vector<2x256xf32>
    %c0_3 = arith.constant 0 : index
    %c0_4 = arith.constant 0 : index
    %4 = vector.load %arg4[%c0_3, %c0_4] : memref<2x256xf32, #tpu.memory_space<vmem>>, vector<2x256xf32>
    tpu.vector_store %arg4[%c0_3, %c0_4], %3 {strides = array<i32>} : memref<2x256xf32, #tpu.memory_space<vmem>>, vector<2x256xf32>,
    return
  }
  func.func @transform_0(%arg0: i32, %arg1: i32) -> (i32, i32) {
    %c0_i32 = arith.constant 0 : i32
    return %arg1, %arg0 : i32, i32
  }
  func.func @transform_1(%arg0: i32, %arg1: i32) -> (i32, i32) {
    %c0_i32 = arith.constant 0 : i32
    %c0_i32_0 = arith.constant 0 : i32
    return %c0_i32, %arg0 : i32, i32
  }
  func.func @transform_2(%arg0: i32, %arg1: i32) -> (i32, i32) {
    %c0_i32 = arith.constant 0 : i32
    return %arg1, %arg0 : i32, i32
  }
}

</mosaic_0001>

<bundles_post_ra>
// kernel: tpu_custom_call.1
= control target key start
LH: loop header
LB: loop body
LE: loop exit
PB: predicated region body
PF: predicated region fallthrough
CT: control target
= control target key end

     0   :  { %7 = vsyncpa [#allocation3], 0  ;;  %s135_s0 = inlined_call_operand.hbm [shape: f32[2,256], index: 0, kind: input, shape index: {}, may-alias: {0,2}]   ;;  %s136_s1 = inlined_call_operand.vmem [shape: f32[1,256], index: 1, kind: input, shape index: {}]   ;;  %s137_s2 = inlined_call_operand.hbm [shape: f32[2,256], index: 2, kind: output, shape index: {}, may-alias: {0,2}]  }
   0x1   :  { %8 = vsyncpa [#allocation4], 0  ;;  %s108_s9 = smov [#allocation2]  }
   0x2   :  { %s15_s10 = sshll.u32 %s108_s9, 4  ;;  %s16_s10 = int_to_ptr.vmem [resolvable:$true] %s15_s10 }
   0x3   :  { %s72_s11 = scalar_lea.vmem %s16_s10, 64  ;;  %p77_p1 = scmp.lt.s32.totalorder %s16_s10, %s16_s10 }
   0x4   :  { %p73_p0 = scmp.ne.s32.totalorder %s16_s10, %s72_s11  ;;  %p78_p2 = scmp.lt.s32.totalorder %s72_s11, %s72_s11 }
   0x6   :  { %p79_p3 = por %p78_p2, %p77_p1 }
   0x8   :  { %p80_p4 = pnand %p79_p3, %p73_p0 }
   0xa   :  { %83 = shalt.err (!%p80_p4)
}
   0xb   :  { %18 = dma.hbm_to_vmem [thread:$0]  %s135_s0, 64, %s16_s10, [#allocation3]  }
   0xc   :  { %104 = dma.done.wait [#allocation3], 64  }
   0xd   :  { %105 = vsyncadd [#allocation3], 4294967232  ;;  %v27_v0 = vlaneseq  ;;  %v109_v1 = vmov 1983009808   ;;  %v25_v7 = vld [vmem:[%s136_s1] sm:$0x3] }
   0xe   :  { %v37_v2 = vunpack.c.l.s4 %v109_v1  ;;  %v24_v12 = vld [vmem:[#allocation2] sm:$0xf]  ;;  %s110_s16 = smov [#allocation5]  }
   0xf   :  { %v28_v3 = vshrl.u32 %v27_v0, 7  ;;  %s52_s0 = sshll.u32 %s110_s16, 4  ;;  %s53_s0 = int_to_ptr.vmem [resolvable:$true] %s52_s0 }
  0x10   :  { %v38_v6 = vunpack.c.0.s8 %v37_v2  ;;  %s84_s17 = scalar_lea.vmem %s53_s0, 64  ;;  %p89_p6 = scmp.lt.s32.totalorder %s53_s0, %s53_s0 }
  0x11   :  { %v29_v4 = vsub.s32 0, %v28_v3  ;;  %v33_v5 = vsub.s32 1, %v28_v3  ;;  %p85_p5 = scmp.ne.s32.totalorder %s53_s0, %s84_s17  ;;  %p90_p7 = scmp.lt.s32.totalorder %s84_s17, %s84_s17 }
  0x12   :  { %v41_v10 = vsub.s32 %v38_v6, %v28_v3 }
  0x13   :  { %v30_v8 = vrot.slane %v25_v7, %v29_v4  ;;  %v34_v9 = vrot.slane %v25_v7, %v33_v5  ;;  %p91_p8 = por %p90_p7, %p89_p6 }
  0x15   :  { %v35_v11 = vcombine.low %v30_v8, %v34_v9  ;;  %p92_p9 = pnand %p91_p8, %p85_p5 }
  0x17   :  { %v42_v13 = vrot.slane %v35_v11, %v41_v10 }
  0x19   :  { %v44_v14 = vadd.f32 %v42_v13, %v24_v12 }
  0x1b   :  { %45 = vst [vmem:[#allocation5] sm:$0xf] %v44_v14 }
  0x1c   :  { %95 = shalt.err (!%p92_p9)
}
  0x1d   :  { %55 = dma.vmem_to_hbm [thread:$0]  %s53_s0, 64, %s137_s2, [#allocation4]  }
  0x1e   :  { %106 = dma.done.wait [#allocation4], 64  }
  0x1f   :  { %107 = vsyncadd [#allocation4], 4294967232 }
  0x20   :  { %59 = vsyncpa [#allocation3], 1 }
  0x21   :  { %60 = vsyncpa [#allocation4], 1 }

</bundles_post_ra>
